<compile_context>
chip_gen: v7x
topology: tpu7x:2x2x1
jax: 0.10.0
libtpu: 0.0.40
codegen_flags: <defaults>
</compile_context>

<pallas_src>
import functools

import jax
import jax.numpy as jnp
from jax.experimental import pallas as pl
from jax.experimental.pallas import tpu as pltpu

_VMEM_LIMIT_BYTES = 32 * 1024 * 1024     # safe on v5e/v6e/v7x (raises v5e's 16 MiB default)
_TILE_BUDGET_BYTES = 20 * 1024 * 1024    # double-buffered tile working set cap


def _round_up(x, m):
    return pl.cdiv(x, m) * m


# ----------------------------- Pallas kernels --------------------------------
def _linear_kernel_single_k(x_ref, w_ref, b_ref, o_ref):
    """Whole K fits in one block: one MXU dot + bias epilogue, no scratch."""
    acc = jnp.dot(x_ref[...], w_ref[...], preferred_element_type=jnp.float32)
    o_ref[...] = (acc + b_ref[...].astype(jnp.float32)).astype(o_ref.dtype)


def _linear_kernel_multi_k(x_ref, w_ref, b_ref, o_ref, acc_ref):
    """One (tm, tn) output tile, accumulating over the (last, 'arbitrary') K axis."""
    k = pl.program_id(2)

    @pl.when(k == 0)
    def _():
        acc_ref[...] = jnp.zeros_like(acc_ref)

    acc_ref[...] += jnp.dot(
        x_ref[...], w_ref[...], preferred_element_type=jnp.float32
    )

    @pl.when(k == pl.num_programs(2) - 1)
    def _():
        o_ref[...] = (acc_ref[...] + b_ref[...].astype(jnp.float32)).astype(o_ref.dtype)


# --------------------------- tile selection -----------------------------------
def _choose_tiles(b_cap, in_dim, out_dim, itemsize):
    """Pick (tm_cap, tn, tk) maximizing tile size under a VMEM budget."""
    sub = 8 if itemsize >= 4 else 16       # sublane granularity (f32 vs bf16)
    tm = min(_round_up(b_cap, sub), 256)
    tn = min(_round_up(out_dim, 128), 512)
    tk = min(_round_up(in_dim, 128), 2048)

    def footprint(tm_, tn_, tk_):
        # 2x (double buffered) inputs + bias + output, plus f32 accumulator scratch.
        return 2 * (tm_ * tk_ + tk_ * tn_ + tn_ + tm_ * tn_) * itemsize + tm_ * tn_ * 4

    while footprint(tm, tn, tk) > _TILE_BUDGET_BYTES and tk > 512:
        tk = max(512, tk // 2)
    while footprint(tm, tn, tk) > _TILE_BUDGET_BYTES and tn > 256:
        tn = max(256, tn // 2)
    while footprint(tm, tn, tk) > _TILE_BUDGET_BYTES and tm > 128:
        tm = max(128, tm // 2)
    return tm, tn, tk


# ---------------------- one-time parameter preparation ------------------------
def prepare_linear_head(w, b, *, compute_dtype=jnp.float32):
    """Pad/transposed-pack the weight and bias ONCE (outside the hot path).

    w : [out_dim, in_dim]  (torch nn.Linear layout)
    b : [out_dim]
    Returns (w_padded [Kp, Np], b_padded [1, Np], meta).
    """
    out_dim, in_dim = w.shape
    itemsize = jnp.dtype(compute_dtype).itemsize
    tm_cap, tn, tk = _choose_tiles(256, in_dim, out_dim, itemsize)

    Kp = _round_up(in_dim, tk)
    Np = _round_up(out_dim, tn)

    w_p = (
        jnp.zeros((Kp, Np), compute_dtype)
        .at[:in_dim, :out_dim]
        .set(w.T.astype(compute_dtype))
    )
    b_p = jnp.zeros((1, Np), compute_dtype).at[0, :out_dim].set(b.astype(compute_dtype))

    meta = dict(
        out_dim=out_dim,
        in_dim=in_dim,
        tm_cap=tm_cap,
        tn=tn,
        tk=tk,
        compute_dtype=compute_dtype,
    )
    return w_p, b_p, meta


# ------------------------------ hot-path call ----------------------------------
@functools.partial(
    jax.jit, static_argnames=("out_dim", "tm", "tn", "tk", "compute_dtype")
)
def _linear_head_impl(x, w_p, b_p, *, out_dim, tm, tn, tk, compute_dtype):
    B, D = x.shape
    Kp, Np = w_p.shape
    Mp = _round_up(B, tm)

    # Only the (small) activation is padded per call; weights were padded at init.
    x_p = jnp.zeros((Mp, Kp), compute_dtype).at[:B, :D].set(x.astype(compute_dtype))

    grid_m, grid_n, grid_k = Mp // tm, Np // tn, Kp // tk
    out_dtype = x.dtype

    if grid_k == 1:
        # Single K block: no accumulator scratch, bias fused into the epilogue.
        out_p = pl.pallas_call(
            _linear_kernel_single_k,
            out_shape=jax.ShapeDtypeStruct((Mp, Np), out_dtype),
            grid_spec=pltpu.PrefetchScalarGridSpec(
                num_scalar_prefetch=0,
                grid=(grid_m, grid_n),
                in_specs=[
                    pl.BlockSpec((tm, Kp), lambda i, j: (i, 0)),   # x tile
                    pl.BlockSpec((Kp, tn), lambda i, j: (0, j)),   # w tile
                    pl.BlockSpec((1, tn), lambda i, j: (0, j)),    # bias tile
                ],
                out_specs=pl.BlockSpec((tm, tn), lambda i, j: (i, j)),
            ),
            compiler_params=pltpu.CompilerParams(
                dimension_semantics=("parallel", "parallel"),
                vmem_limit_bytes=_VMEM_LIMIT_BYTES,
            ),
        )(x_p, w_p, b_p)
    else:
        out_p = pl.pallas_call(
            _linear_kernel_multi_k,
            out_shape=jax.ShapeDtypeStruct((Mp, Np), out_dtype),
            grid_spec=pltpu.PrefetchScalarGridSpec(
                num_scalar_prefetch=0,
                grid=(grid_m, grid_n, grid_k),       # reduction axis last
                in_specs=[
                    pl.BlockSpec((tm, tk), lambda i, j, k: (i, k)),  # x tile
                    pl.BlockSpec((tk, tn), lambda i, j, k: (k, j)),  # w tile
                    pl.BlockSpec((1, tn), lambda i, j, k: (0, j)),   # bias tile
                ],
                out_specs=pl.BlockSpec((tm, tn), lambda i, j, k: (i, j)),
                scratch_shapes=[pltpu.VMEM((tm, tn), jnp.float32)],
            ),
            compiler_params=pltpu.CompilerParams(
                dimension_semantics=("parallel", "parallel", "arbitrary"),
                vmem_limit_bytes=_VMEM_LIMIT_BYTES,
            ),
        )(x_p, w_p, b_p)

    return out_p[:B, :out_dim]


def linear_head(x, w_p, b_p, meta):
    """y = x @ W^T + b using the pre-padded parameters from prepare_linear_head."""
    itemsize = jnp.dtype(meta["compute_dtype"]).itemsize
    sub = 8 if itemsize >= 4 else 16
    tm = min(_round_up(x.shape[0], sub), meta["tm_cap"])
    return _linear_head_impl(
        x,
        w_p,
        b_p,
        out_dim=meta["out_dim"],
        tm=tm,
        tn=meta["tn"],
        tk=meta["tk"],
        compute_dtype=meta["compute_dtype"],
    )


# ------------------------- deterministic param init --------------------------
def init_linear_params(key, in_dim, out_dim, head_init_std=None):
    """Mirrors Linear._initialize_weights (xavier_uniform or trunc_normal, zero bias)."""
    wkey, _ = jax.random.split(key)
    if head_init_std is not None:
        # trunc_normal_(mean=0, std=head_init_std), truncated at +/- 2 std
        w = head_init_std * jax.random.truncated_normal(
            wkey, -2.0, 2.0, (out_dim, in_dim), dtype=jnp.float32
        )
    else:
        # xavier_uniform_ on a [out_dim, in_dim] weight
        limit = (6.0 / (in_dim + out_dim)) ** 0.5
        w = jax.random.uniform(
            wkey, (out_dim, in_dim), dtype=jnp.float32, minval=-limit, maxval=limit
        )
    b = jnp.zeros((out_dim,), dtype=jnp.float32)
    return w, b


# ---------------------------------- main --------------------------------------
if __name__ == "__main__":
    key = jax.random.PRNGKey(0)
    xkey, pkey = jax.random.split(key)

    batch, in_dim, out_dim = 2, 32, 8
    x = jax.random.normal(xkey, (batch, in_dim), dtype=jnp.float32)

    w, b = init_linear_params(pkey, in_dim, out_dim)  # w: [out_dim, in_dim] (torch layout)

    # One-time padding / packing of parameters (NOT in the per-call hot path).
    w_p, b_p, meta = prepare_linear_head(w, b, compute_dtype=jnp.float32)

    y = linear_head(x, w_p, b_p, meta)
    y = jax.block_until_ready(y)

    # Sanity check against plain JAX reference (x @ W^T + b).
    y_ref = x @ w.T + b
    assert y.shape == (batch, out_dim)
    assert jnp.allclose(y, y_ref, atol=1e-5, rtol=1e-5)

    print("KERNEL_OK")
</pallas_src>

<mosaic_0001>
module attributes {stable_mosaic.version = 11 : i64} {
  func.func @_linear_kernel_single_k(%arg0: i32, %arg1: i32, %arg2: memref<8x128xf32, #tpu.memory_space<vmem>>, %arg3: memref<128x128xf32, #tpu.memory_space<vmem>>, %arg4: memref<1x128xf32, #tpu.memory_space<vmem>>, %arg5: memref<8x128xf32, #tpu.memory_space<vmem>>) attributes {dimension_semantics = [#tpu.dimension_semantics<parallel>, #tpu.dimension_semantics<parallel>], iteration_bounds = array<i64: 1, 1>, scalar_prefetch = 0 : i64, scratch_operands = 0 : i64, tpu.core_type = #tpu.core_type<tc>, window_params = [{transform_indices = @transform_0, window_bounds = array<i64: 8, 128>}, {transform_indices = @transform_1, window_bounds = array<i64: 128, 128>}, {transform_indices = @transform_2, window_bounds = array<i64: 1, 128>}, {transform_indices = @transform_3, window_bounds = array<i64: 8, 128>}]} {
    %c0 = arith.constant 0 : index
    %c0_0 = arith.constant 0 : index
    %0 = vector.load %arg2[%c0, %c0_0] : memref<8x128xf32, #tpu.memory_space<vmem>>, vector<8x128xf32>
    %c0_1 = arith.constant 0 : index
    %c0_2 = arith.constant 0 : index
    %1 = vector.load %arg3[%c0_1, %c0_2] : memref<128x128xf32, #tpu.memory_space<vmem>>, vector<128x128xf32>
    %cst = arith.constant dense<0.000000e+00> : vector<8x128xf32>
    %2 = tpu.matmul %0, %1, %cst {dimension_numbers = #tpu.dot_dimension_numbers<[1], [0], [0], [1], [0, 0, 1, 1], [], []>} : vector<8x128xf32>, vector<128x128xf32>, vector<8x128xf32> -> vector<8x128xf32>
    %c0_3 = arith.constant 0 : index
    %c0_4 = arith.constant 0 : index
    %3 = vector.load %arg4[%c0_3, %c0_4] : memref<1x128xf32, #tpu.memory_space<vmem>>, vector<1x128xf32>
    %4 = vector.broadcast %3 : vector<1x128xf32> to vector<8x128xf32>
    %5 = arith.addf %2, %4 : vector<8x128xf32>
    %c0_5 = arith.constant 0 : index
    %c0_6 = arith.constant 0 : index
    %6 = vector.load %arg5[%c0_5, %c0_6] : memref<8x128xf32, #tpu.memory_space<vmem>>, vector<8x128xf32>
    tpu.vector_store %arg5[%c0_5, %c0_6], %5 {strides = array<i32>} : memref<8x128xf32, #tpu.memory_space<vmem>>, vector<8x128xf32>,
    return
  }
  func.func @transform_0(%arg0: i32, %arg1: i32) -> (i32, i32) {
    %c0_i32 = arith.constant 0 : i32
    %c0_i32_0 = arith.constant 0 : i32
    return %arg0, %c0_i32 : i32, i32
  }
  func.func @transform_1(%arg0: i32, %arg1: i32) -> (i32, i32) {
    %c0_i32 = arith.constant 0 : i32
    %c0_i32_0 = arith.constant 0 : i32
    return %c0_i32, %arg1 : i32, i32
  }
  func.func @transform_2(%arg0: i32, %arg1: i32) -> (i32, i32) {
    %c0_i32 = arith.constant 0 : i32
    %c0_i32_0 = arith.constant 0 : i32
    return %c0_i32, %arg1 : i32, i32
  }
  func.func @transform_3(%arg0: i32, %arg1: i32) -> (i32, i32) {
    %c0_i32 = arith.constant 0 : i32
    return %arg0, %arg1 : i32, i32
  }
}

</mosaic_0001>

<bundles_post_ra>
// kernel: _linear_head_impl.1
= control target key start
LH: loop header
LB: loop body
LE: loop exit
PB: predicated region body
PF: predicated region fallthrough
CT: control target
= control target key end

     0   :  { %8 = vsyncpa [#allocation3], 0  ;;  %s235_s12 = smov [#allocation2]   ;;  %s282_s0 = inlined_call_operand.vmem [shape: f32[8,128], index: 0, kind: input, shape index: {}]   ;;  %s283_s1 = inlined_call_operand.hbm [shape: f32[128,128], index: 1, kind: input, shape index: {}]   ;;  %s284_s2 = inlined_call_operand.vmem [shape: f32[1,128], index: 2, kind: input, shape index: {}]   ;;  %s285_s3 = inlined_call_operand.vmem [shape: f32[8,128], index: 3, kind: output, shape index: {}]  }
   0x1   :  { %s16_s13 = sshll.u32 %s235_s12, 4  ;;  %s211_s16 = scalar_lea.hbm %s283_s1, 2048  ;;  %s17_s13 = int_to_ptr.vmem [resolvable:$true] %s16_s13 }
   0x2   :  { %p212_p0 = scmp.ne.s32.totalorder %s283_s1, %s211_s16  ;;  %p215_p1 = scmp.lt.u32.totalorder %s211_s16, %s283_s1 }
   0x4   :  { %p217_p2 = pnand %p215_p1, %p212_p0 }
   0x6   :  { %220 = shalt.err (!%p217_p2)
}
   0x7   :  { %s221_s21 = scalar_lea.vmem %s17_s13, 2048  ;;  %p226_p4 = scmp.lt.s32.totalorder %s17_s13, %s17_s13 }
   0x8   :  { %p222_p3 = scmp.ne.s32.totalorder %s17_s13, %s221_s21  ;;  %p227_p5 = scmp.lt.s32.totalorder %s221_s21, %s221_s21 }
   0xa   :  { %p228_p6 = por %p227_p5, %p226_p4 }
   0xc   :  { %p229_p7 = pnand %p228_p6, %p222_p3 }
   0xe   :  { %232 = shalt.err (!%p229_p7)
}
   0xf   :  { %s236_s22 = smov 128   ;;  %s237_s23 = smov 8  }
  0x10   :  { %22 = dma.hbm_to_vmem [thread:$0]  %s283_s1, 2048, %s17_s13, [#allocation3], %s236_s22, %s236_s22, %s237_s23  }
  0x11   :  { %233 = dma.done.wait [#allocation3], 2048  }
  0x12   :  { %234 = vsyncadd [#allocation3], 4294965248  ;;  %v238_v0 = vmov 0.0|0.0   ;;  %vm239_vm0 = vmmov 0   ;;  %v240_v1 = vmov 0.0   ;;  %v29_v2 = vld [vmem:[#allocation2] sm:$0xff] }
  0x13   :  { %181 = vmatprep.subr.bf16.mxu0 %v238_v0  ;;  %178 = vmatprep.mubr.msk.f32.mxu0 %vm239_vm0, %v240_v1  ;;  %v30_v3 = vld [vmem:[#allocation2 + $0x8] sm:$0xff]  ;;  %v31_v4 = vld [vmem:[#allocation2 + $0x10] sm:$0xff]  ;;  %v32_v6 = vld [vmem:[#allocation2 + $0x18] sm:$0xff] }
  0x14   :  { %v182_v5 = vpack.c.bf16 %v30_v3, %v29_v2  ;;  %v185_v7 = vpack.c.bf16 %v32_v6, %v31_v4  ;;  %v33_v8 = vld [vmem:[#allocation2 + $0x20] sm:$0xff]  ;;  %v34_v9 = vld [vmem:[#allocation2 + $0x28] sm:$0xff]  ;;  %v35_v11 = vld [vmem:[#allocation2 + $0x30] sm:$0xff] }
  0x15   :  { %v188_v10 = vpack.c.bf16 %v34_v9, %v33_v8  ;;  %v36_v12 = vld [vmem:[#allocation2 + $0x38] sm:$0xff]  ;;  %v37_v14 = vld [vmem:[#allocation2 + $0x40] sm:$0xff]  ;;  %v38_v15 = vld [vmem:[#allocation2 + $0x48] sm:$0xff] }
  0x16   :  { %183 = vmatpush3.bf16.msra.mxu0 %v182_v5  ;;  %v191_v13 = vpack.c.bf16 %v36_v12, %v35_v11  ;;  %v194_v16 = vpack.c.bf16 %v38_v15, %v37_v14  ;;  %v39_v17 = vld [vmem:[#allocation2 + $0x50] sm:$0xff]  ;;  %v40_v18 = vld [vmem:[#allocation2 + $0x58] sm:$0xff]  ;;  %v41_v20 = vld [vmem:[#allocation2 + $0x60] sm:$0xff] }
  0x17   :  { %184 = vmatprep.subr.bf16.mxu0 %v238_v0  ;;  %v197_v19 = vpack.c.bf16 %v40_v18, %v39_v17  ;;  %v42_v21 = vld [vmem:[#allocation2 + $0x68] sm:$0xff]  ;;  %v43_v23 = vld [vmem:[#allocation2 + $0x70] sm:$0xff]  ;;  %v44_v24 = vld [vmem:[#allocation2 + $0x78] sm:$0xff] }
  0x18   :  { %v200_v22 = vpack.c.bf16 %v42_v21, %v41_v20  ;;  %v203_v25 = vpack.c.bf16 %v44_v24, %v43_v23  ;;  %v28_v26 = vld [vmem:[%s282_s0] sm:$0xff] }
  0x19   :  { %v128_v27 = vld [vmem:[%s284_s2] ss:$0 sm:$0xff] }
  0x1a   :  { %186 = vmatpush3.bf16.msra.mxu0 %v185_v7 }
  0x1b   :  { %187 = vmatprep.subr.bf16.mxu0 %v238_v0 }
  0x1e   :  { %189 = vmatpush3.bf16.msra.mxu0 %v188_v10 }
  0x1f   :  { %190 = vmatprep.subr.bf16.mxu0 %v238_v0 }
  0x22   :  { %192 = vmatpush3.bf16.msra.mxu0 %v191_v13 }
  0x23   :  { %193 = vmatprep.subr.bf16.mxu0 %v238_v0 }
  0x26   :  { %195 = vmatpush3.bf16.msra.mxu0 %v194_v16 }
  0x27   :  { %196 = vmatprep.subr.bf16.mxu0 %v238_v0 }
  0x2a   :  { %198 = vmatpush3.bf16.msra.mxu0 %v197_v19 }
  0x2b   :  { %199 = vmatprep.subr.bf16.mxu0 %v238_v0 }
  0x2e   :  { %201 = vmatpush3.bf16.msra.mxu0 %v200_v22 }
  0x2f   :  { %202 = vmatprep.subr.bf16.mxu0 %v238_v0 }
  0x32   :  { %204 = vmatpush3.bf16.msra.mxu0 %v203_v25 }
  0x35   :  { %179 = vmatmul.mubr.f32.vlgmr.msra.gmra.mrb[0].mxu0 %v28_v26 }
 0x108   :  { %v118_v28 = vpop.f32.mrb[0].mxu0 }
 0x109   :  { %v119_v29 = vadd.f32 %v128_v27, %v118_v28  ;;  %v180_v30 = vpop.f32.mrb[1].mxu0 }
 0x10b   :  { %122 = vst [vmem:[%s285_s3] sm:$0xff] %v119_v29 }
 0x10c   :  { %127 = vsyncpa [#allocation3], 1 }

</bundles_post_ra>
